<compile_context>
chip_gen: v5e
topology: v5e:2x2
jax: 0.10.0
libtpu: 0.0.40
codegen_flags: <defaults>
</compile_context>

<pallas_src>
import math

import jax
import jax.numpy as jnp
from jax.experimental import pallas as pl
from jax.experimental.pallas import tpu as pltpu


def _clip_custom_kernel(x_ref, o_ref, *, min_value, max_value):
    # Fused dtype promotion + f32 compute (accuracy for bf16/f16, promotion
    # for integer images), cast back to the output dtype on store.
    x = x_ref[...].astype(jnp.float32)
    x = jnp.minimum(jnp.maximum(x, min_value), max_value)
    y = (x - min_value) / (max_value - min_value)
    o_ref[...] = y.astype(o_ref.dtype)


_LANE_CANDIDATES = (8192, 4096, 2048, 1024, 512, 256, 128)


def _sublane_multiple(dtype):
    # 8 for 32-bit, 16 for 16-bit, 32 for 8-bit dtypes.
    return max(8, 32 // jnp.dtype(dtype).itemsize)


def _clip_custom_2d(x2d, out_dtype, min_value, max_value, *,
                    target_block_bytes, donate):
    """Run the streaming kernel over a lane-dense (rows, lanes) slab."""
    rows, lanes = x2d.shape
    in_itemsize = jnp.dtype(x2d.dtype).itemsize
    out_itemsize = jnp.dtype(out_dtype).itemsize
    total = rows * lanes

    # Sublane packing multiple must satisfy both input and output dtypes.
    sublane = max(_sublane_multiple(x2d.dtype), _sublane_multiple(out_dtype))

    # ~target_block_bytes for the wider of the two dtypes per block.
    bytes_per_row = lanes * max(in_itemsize, out_itemsize)
    target_rows = max(sublane, target_block_bytes // bytes_per_row)
    target_rows = max(sublane, (target_rows // sublane) * sublane)

    if rows > target_rows:
        block_rows = target_rows                      # >= 2 grid steps
    elif rows >= 2 * sublane and total * max(in_itemsize, out_itemsize) >= (1 << 20):
        # Non-trivial tensor that would otherwise be a single block: split so
        # the "parallel" grid axis can shard across both v7x TensorCores.
        block_rows = max(sublane, (((rows + 1) // 2) // sublane) * sublane)
    else:
        block_rows = rows                             # full axis, single block

    grid = (pl.cdiv(rows, block_rows),)

    kernel = lambda x_ref, o_ref: _clip_custom_kernel(
        x_ref, o_ref, min_value=min_value, max_value=max_value)

    io_aliases = {}
    if donate and jnp.dtype(x2d.dtype) == jnp.dtype(out_dtype):
        io_aliases = {0: 0}   # reuse the donated input buffer for the output

    return pl.pallas_call(
        kernel,
        out_shape=jax.ShapeDtypeStruct((rows, lanes), out_dtype),
        grid=grid,
        in_specs=[pl.BlockSpec((block_rows, lanes), lambda i: (i, 0))],
        out_specs=pl.BlockSpec((block_rows, lanes), lambda i: (i, 0)),
        input_output_aliases=io_aliases,
        compiler_params=pltpu.CompilerParams(
            dimension_semantics=("parallel",),
            vmem_limit_bytes=48 * 1024 * 1024),
        cost_estimate=pl.CostEstimate(
            flops=4 * total,
            transcendentals=0,
            bytes_accessed=total * (in_itemsize + out_itemsize)),
    )(x2d)


def clip_custom(img, min_value=0.0, max_value=1.0, *,
                target_block_bytes=8 * 1024 * 1024, donate=False):
    """Elementwise clamp + rescale, matching ClipCustom.forward semantics."""
    orig_shape = img.shape
    min_value = float(min_value)
    max_value = float(max_value)

    # Torch's true division promotes integer tensors to float; keep floating
    # inputs in their own dtype and promote everything else to float32
    # *inside* the kernel (no extra HBM cast pass in the wrapper).
    if jnp.issubdtype(img.dtype, jnp.floating):
        out_dtype = img.dtype
    else:
        out_dtype = jnp.float32

    total = math.prod(orig_shape) if orig_shape else 1

    lanes = None
    for cand in _LANE_CANDIDATES:
        if total % cand == 0:
            lanes = cand
            break

    if lanes is not None:
        x2d = img.reshape(total // lanes, lanes)
        out2d = _clip_custom_2d(x2d, out_dtype, min_value, max_value,
                                target_block_bytes=target_block_bytes,
                                donate=donate)
        return out2d.reshape(orig_shape)

    # --- Ragged fallback (rare for image tensors) -------------------------
    # Kernel on the 128-aligned prefix, tiny (<128-element) tail with jnp.
    def _jnp_path(x):
        x = x.astype(jnp.float32)
        x = jnp.clip(x, min_value, max_value)
        return ((x - min_value) / (max_value - min_value)).astype(out_dtype)

    flat = img.reshape(-1)
    prefix = (total // 128) * 128
    if prefix == 0:
        # Fewer than 128 elements: a kernel launch is pure overhead.
        return _jnp_path(flat).reshape(orig_shape)

    lanes = next(c for c in _LANE_CANDIDATES if prefix % c == 0)
    main2d = flat[:prefix].reshape(prefix // lanes, lanes)
    out_main = _clip_custom_2d(main2d, out_dtype, min_value, max_value,
                               target_block_bytes=target_block_bytes,
                               donate=False).reshape(-1)
    out_tail = _jnp_path(flat[prefix:])
    return jnp.concatenate([out_main, out_tail]).reshape(orig_shape)


def clip_custom_ref(img, min_value=0.0, max_value=1.0):
    img = jnp.clip(img, min_value, max_value)
    return (img - min_value) / (max_value - min_value)


if __name__ == "__main__":
    key = jax.random.PRNGKey(0)
    k1, k2, k3 = jax.random.split(key, 3)

    # 1) Standard float32 NCHW image batch (lane-aligned main path).
    x = jax.random.uniform(k1, (2, 4, 16, 16), dtype=jnp.float32,
                           minval=-0.5, maxval=1.5)
    out = jax.block_until_ready(clip_custom(x, 0.0, 1.0))
    ref = clip_custom_ref(x, 0.0, 1.0)
    assert out.shape == x.shape and out.dtype == x.dtype
    assert jnp.allclose(out, ref, atol=1e-6), "f32 mismatch vs reference"

    # 2) uint8 image: integer -> float32 promotion fused into the kernel.
    x_u8 = jax.random.randint(k2, (2, 3, 32, 32), 0, 256,
                              dtype=jnp.int32).astype(jnp.uint8)
    out_u8 = jax.block_until_ready(clip_custom(x_u8, 3.0, 200.0))
    ref_u8 = clip_custom_ref(x_u8.astype(jnp.float32), 3.0, 200.0)
    assert out_u8.shape == x_u8.shape and out_u8.dtype == jnp.float32
    assert jnp.allclose(out_u8, ref_u8, atol=1e-5), "uint8 mismatch vs ref"

    # 3) Ragged element count (prefix kernel + jnp tail, no pad / no slice-of-all).
    x_rag = jax.random.uniform(k3, (7, 19), dtype=jnp.float32,
                               minval=-1.0, maxval=2.0)
    out_rag = jax.block_until_ready(clip_custom(x_rag, 0.2, 0.8))
    ref_rag = clip_custom_ref(x_rag, 0.2, 0.8)
    assert out_rag.shape == x_rag.shape and out_rag.dtype == x_rag.dtype
    assert jnp.allclose(out_rag, ref_rag, atol=1e-6), "ragged mismatch vs ref"

    print("KERNEL_OK")
</pallas_src>

<mosaic_0001>
module attributes {stable_mosaic.version = 11 : i64} {
  func.func @_lambda_(%arg0: i32, %arg1: memref<1x2048xf32, #tpu.memory_space<vmem>>, %arg2: memref<1x2048xf32, #tpu.memory_space<vmem>>) attributes {dimension_semantics = [#tpu.dimension_semantics<parallel>], iteration_bounds = array<i64: 1>, scalar_prefetch = 0 : i64, scratch_operands = 0 : i64, tpu.core_type = #tpu.core_type<tc>, window_params = [{transform_indices = @transform_0, window_bounds = array<i64: 1, 2048>}, {transform_indices = @transform_1, window_bounds = array<i64: 1, 2048>}]} {
    %c0 = arith.constant 0 : index
    %c0_0 = arith.constant 0 : index
    %0 = vector.load %arg1[%c0, %c0_0] : memref<1x2048xf32, #tpu.memory_space<vmem>>, vector<1x2048xf32>
    %cst = arith.constant 0.000000e+00 : f32
    %1 = vector.broadcast %cst : f32 to vector<1x2048xf32>
    %2 = arith.maximumf %0, %1 : vector<1x2048xf32>
    %cst_1 = arith.constant 1.000000e+00 : f32
    %3 = vector.broadcast %cst_1 : f32 to vector<1x2048xf32>
    %4 = arith.minimumf %2, %3 : vector<1x2048xf32>
    %cst_2 = arith.constant 0.000000e+00 : f32
    %5 = vector.broadcast %cst_2 : f32 to vector<1x2048xf32>
    %6 = arith.subf %4, %5 : vector<1x2048xf32>
    %cst_3 = arith.constant 1.000000e+00 : f32
    %7 = vector.broadcast %cst_3 : f32 to vector<1x2048xf32>
    %8 = arith.divf %6, %7 : vector<1x2048xf32>
    %c0_4 = arith.constant 0 : index
    %c0_5 = arith.constant 0 : index
    %9 = vector.load %arg2[%c0_4, %c0_5] : memref<1x2048xf32, #tpu.memory_space<vmem>>, vector<1x2048xf32>
    tpu.vector_store %arg2[%c0_4, %c0_5], %8 {strides = array<i32>} : memref<1x2048xf32, #tpu.memory_space<vmem>>, vector<1x2048xf32>,
    return
  }
  func.func @transform_0(%arg0: i32) -> (i32, i32) {
    %c0_i32 = arith.constant 0 : i32
    %c0_i32_0 = arith.constant 0 : i32
    return %arg0, %c0_i32 : i32, i32
  }
  func.func @transform_1(%arg0: i32) -> (i32, i32) {
    %c0_i32 = arith.constant 0 : i32
    %c0_i32_0 = arith.constant 0 : i32
    return %arg0, %c0_i32 : i32, i32
  }
}

</mosaic_0001>

<bundles_post_ra>
// kernel: tpu_custom_call.1
= control target key start
LH: loop header
LB: loop body
LE: loop exit
PB: predicated region body
PF: predicated region fallthrough
CT: control target
= control target key end

     0   :  { %6 = vsyncpa [#allocation3], 0  ;;  %s120_s0 = inlined_call_operand.hbm [shape: f32[1,2048], index: 0, kind: input, shape index: {}]   ;;  %s121_s1 = inlined_call_operand.hbm [shape: f32[1,2048], index: 1, kind: output, shape index: {}]  }
   0x1   :  { %7 = vsyncpa [#allocation4], 0  ;;  %s13_s8 = sshll.u32 %s120_s0, 4  ;;  %s102_s9 = smov [#allocation2]   ;;  %s14_s8 = int_to_ptr.hbm [resolvable:$true] %s13_s8 }
   0x2   :  { %s15_s10 = sshll.u32 %s102_s9, 4  ;;  %s16_s10 = int_to_ptr.vmem [resolvable:$true] %s15_s10 }
   0x3   :  { %18 = dma.hbm_to_vmem [thread:$0]  %s14_s8, 256, %s16_s10, [#allocation3]  }
   0x4   :  { %98 = dma.done.wait [#allocation3], 256  }
   0x5   :  { %99 = vsyncadd [#allocation3], 4294967040  ;;  %v23_v0 = vld [vmem:[#allocation2] sm:$0xff]  ;;  %v24_v1 = vld [vmem:[#allocation2 + $0x8] sm:$0xff]  ;;  %s103_s11 = smov [#allocation5]   ;;  %s38_s15 = sshll.u32 %s121_s1, 4  ;;  %s39_s15 = int_to_ptr.hbm [resolvable:$true] %s38_s15 }
   0x6   :  { %v25_v2 = vmax.f32 %v23_v0, 0.0  ;;  %v26_v3 = vmax.f32 %v24_v1, 0.0  ;;  %s36_s12 = sshll.u32 %s103_s11, 4  ;;  %s37_s12 = int_to_ptr.vmem [resolvable:$true] %s36_s12 }
   0x8   :  { %v27_v4 = vmin.f32 %v25_v2, 1.0  ;;  %v28_v5 = vmin.f32 %v26_v3, 1.0 }
   0xa   :  { %29 = vst [vmem:[#allocation5] sm:$0xff] %v27_v4 }
   0xb   :  { %30 = vst [vmem:[#allocation5 + $0x8] sm:$0xff] %v28_v5 }
   0xc   :  { %41 = dma.vmem_to_hbm [thread:$0]  %s37_s12, 256, %s39_s15, [#allocation4]  }
   0xd   :  { %100 = dma.done.wait [#allocation4], 256  }
   0xe   :  { %101 = vsyncadd [#allocation4], 4294967040 }
   0xf   :  { %46 = vsyncpa [#allocation3], 1 }
  0x10   :  { %47 = vsyncpa [#allocation4], 1 }

</bundles_post_ra>
